<compile_context>
chip_gen: v7x
topology: tpu7x:2x2x1
jax: 0.10.0
libtpu: 0.0.40
codegen_flags: <defaults>
</compile_context>

<pallas_src>
import math
import functools

import jax
import jax.numpy as jnp
from jax import lax
from jax.experimental import pallas as pl
from jax.experimental.pallas import tpu as pltpu


# ---------------------------------------------------------------------------
# Tile helper: largest multiple of `align` that divides `dim` and is <= target,
# otherwise fall back to the full dim (always legal as a block size).
# ---------------------------------------------------------------------------
def _pick_tile(dim, target, align):
    if dim <= target:
        return dim
    t = (target // align) * align
    while t >= align:
        if dim % t == 0:
            return t
        t -= align
    return dim


# ---------------------------------------------------------------------------
# Tiled linear:  y = x @ W + b   (bf16 MXU operands, f32 accumulator)
# ---------------------------------------------------------------------------
def _linear_kernel(x_ref, w_ref, b_ref, o_ref, acc_ref):
    k = pl.program_id(2)

    @pl.when(k == 0)
    def _():
        acc_ref[...] = jnp.zeros_like(acc_ref)

    acc_ref[...] += jnp.dot(x_ref[...], w_ref[...],
                            preferred_element_type=jnp.float32)

    @pl.when(k == pl.num_programs(2) - 1)
    def _():
        o_ref[...] = (acc_ref[...] + b_ref[...]).astype(o_ref.dtype)


def pallas_linear(x2d, w, b, *, out_dtype=None, tm=512, tn=512, tk=512):
    """y = x2d @ w + b with an (M, N, K)-tiled, software-pipelined matmul."""
    M, K = x2d.shape
    N = w.shape[1]
    out_dtype = out_dtype or x2d.dtype
    tm = _pick_tile(M, tm, 8)
    tn = _pick_tile(N, tn, 128)
    tk = _pick_tile(K, tk, 128)
    grid = (M // tm, N // tn, K // tk)
    return pl.pallas_call(
        _linear_kernel,
        out_shape=jax.ShapeDtypeStruct((M, N), out_dtype),
        grid=grid,
        in_specs=[
            pl.BlockSpec((tm, tk), lambda i, j, k: (i, k)),
            pl.BlockSpec((tk, tn), lambda i, j, k: (k, j)),
            pl.BlockSpec((1, tn), lambda i, j, k: (0, j)),
        ],
        out_specs=pl.BlockSpec((tm, tn), lambda i, j, k: (i, j)),
        scratch_shapes=[pltpu.VMEM((tm, tn), jnp.float32)],
        compiler_params=pltpu.CompilerParams(
            dimension_semantics=("parallel", "parallel", "arbitrary"),
            vmem_limit_bytes=32 * 1024 * 1024),
    )(x2d, w, b.reshape(1, N))


# ---------------------------------------------------------------------------
# Flash-attention kernel: grid (B, h, Sq-tiles, KV-tiles), online softmax.
# 1/sqrt(d_k) is pre-folded into the Q projection weights.
# ---------------------------------------------------------------------------
def _flash_attn_kernel(*refs, mask_mode):
    if mask_mode == "none":
        q_ref, k_ref, v_ref, o_ref, m_sc, l_sc, acc_sc = refs
        mask_ref = None
    else:
        q_ref, k_ref, v_ref, mask_ref, o_ref, m_sc, l_sc, acc_sc = refs

    ki = pl.program_id(3)

    @pl.when(ki == 0)
    def _():
        m_sc[...] = jnp.full_like(m_sc, -jnp.inf)
        l_sc[...] = jnp.zeros_like(l_sc)
        acc_sc[...] = jnp.zeros_like(acc_sc)

    q = q_ref[0, 0]                       # (tq, d_k)  bf16, lane-dense DMA tile
    k = k_ref[0, 0]                       # (tk, d_k)  bf16
    v = v_ref[0, 0]                       # (tk, d_k)  bf16

    # scores (tq, tk): contract on d_k without materializing k^T; f32 accumulation.
    s = lax.dot_general(q, k, (((1,), (1,)), ((), ())),
                        preferred_element_type=jnp.float32)

    if mask_mode == "padding":
        keep = mask_ref[0]                # (1, tk) int8, broadcasts over query rows
        s = jnp.where(keep == 0, jnp.float32(-1000000000.0), s)
    elif mask_mode == "dense":
        keep = mask_ref[0]                # (tq, tk) int8
        s = jnp.where(keep == 0, jnp.float32(-1000000000.0), s)

    # online softmax (f32 on VPU/EUP; v5e has no bf16 elementwise path)
    m_prev = m_sc[...]
    m_new = jnp.maximum(m_prev, jnp.max(s, axis=-1, keepdims=True))
    alpha = jnp.exp(m_prev - m_new)
    p = jnp.exp(s - m_new)
    l_sc[...] = alpha * l_sc[...] + jnp.sum(p, axis=-1, keepdims=True)
    # TODO(synk): dropout(p) omitted (eval mode / identity).
    acc_sc[...] = alpha * acc_sc[...] + jnp.dot(
        p.astype(v.dtype), v, preferred_element_type=jnp.float32)
    m_sc[...] = m_new

    @pl.when(ki == pl.num_programs(3) - 1)
    def _():
        o_ref[0, 0] = (acc_sc[...] *
                       pl.reciprocal(l_sc[...], approx=True)).astype(o_ref.dtype)


def pallas_flash_attention(q, k, v, mask_arr, *, mask_mode,
                           tq_target=256, tk_target=512):
    """q/k/v: (B, h, S, d_k) bf16.  Returns per-head context (B, h, Sq, d_k) bf16."""
    B, H, Sq, Dk = q.shape
    Sk = k.shape[2]
    tq = _pick_tile(Sq, tq_target, 8)
    tk = _pick_tile(Sk, tk_target, 128)
    grid = (B, H, Sq // tq, Sk // tk)

    in_specs = [
        pl.BlockSpec((1, 1, tq, Dk), lambda b, h, qi, ki: (b, h, qi, 0)),
        pl.BlockSpec((1, 1, tk, Dk), lambda b, h, qi, ki: (b, h, ki, 0)),
        pl.BlockSpec((1, 1, tk, Dk), lambda b, h, qi, ki: (b, h, ki, 0)),
    ]
    args = [q, k, v]
    if mask_mode == "padding":
        in_specs.append(pl.BlockSpec((1, 1, tk), lambda b, h, qi, ki: (b, 0, ki)))
        args.append(mask_arr)
    elif mask_mode == "dense":
        in_specs.append(pl.BlockSpec((1, tq, tk), lambda b, h, qi, ki: (b, qi, ki)))
        args.append(mask_arr)

    kern = functools.partial(_flash_attn_kernel, mask_mode=mask_mode)
    # NOTE: output last dim is d_k (<128 for small heads -> masked partial stores);
    # acceptable since output bytes are small relative to the matmul traffic.
    return pl.pallas_call(
        kern,
        out_shape=jax.ShapeDtypeStruct((B, H, Sq, Dk), q.dtype),
        grid=grid,
        in_specs=in_specs,
        out_specs=pl.BlockSpec((1, 1, tq, Dk), lambda b, h, qi, ki: (b, h, qi, 0)),
        scratch_shapes=[pltpu.VMEM((tq, 1), jnp.float32),
                        pltpu.VMEM((tq, 1), jnp.float32),
                        pltpu.VMEM((tq, Dk), jnp.float32)],
        compiler_params=pltpu.CompilerParams(
            dimension_semantics=("parallel", "parallel", "parallel", "arbitrary"),
            vmem_limit_bytes=32 * 1024 * 1024),
    )(*args)


# ---------------------------------------------------------------------------
# Module wrapper
# ---------------------------------------------------------------------------
class MultiHeadedAttentionPallas:
    def __init__(self, h, d_model, key, dropout=0.1):
        assert d_model % h == 0
        self.d_k = d_model // h
        self.h = h
        self.d_model = d_model
        self.dropout_p = dropout  # TODO(synk): eval-mode only (identity)

        # 4 Linear(d_model, d_model) layers; PyTorch default init:
        # U(-1/sqrt(in), 1/sqrt(in)) for both weight and bias.
        bound = 1.0 / math.sqrt(d_model)
        keys = jax.random.split(key, 8)
        self.weights, self.biases = [], []   # f32 masters, stored (in, out)
        for i in range(4):
            w = jax.random.uniform(keys[2 * i], (d_model, d_model),
                                   jnp.float32, -bound, bound)
            b = jax.random.uniform(keys[2 * i + 1], (d_model,),
                                   jnp.float32, -bound, bound)
            self.weights.append(w)
            self.biases.append(b)

        # bf16 compute copies; 1/sqrt(d_k) folded into the Q projection.
        scale = 1.0 / math.sqrt(self.d_k)
        wq, bq = self.weights[0] * scale, self.biases[0] * scale
        self.w_q = wq.astype(jnp.bfloat16)
        self.w_k = self.weights[1].astype(jnp.bfloat16)
        self.w_v = self.weights[2].astype(jnp.bfloat16)
        self.w_out = self.weights[3].astype(jnp.bfloat16)
        self.b_q, self.b_k, self.b_v = bq, self.biases[1], self.biases[2]
        self.b_out = self.biases[3]
        # Fused QKV projection (used when query is key is value).
        self.w_qkv = jnp.concatenate([wq, self.weights[1], self.weights[2]],
                                     axis=1).astype(jnp.bfloat16)      # (D, 3D)
        self.b_qkv = jnp.concatenate([bq, self.biases[1], self.biases[2]])

    def __call__(self, query, key, value, mask=None):
        B, Sq, D = query.shape
        Sk = key.shape[1]
        h, d_k = self.h, self.d_k
        bf16 = jnp.bfloat16

        # ----- projections (bf16 MXU operands, f32 accumulation, bf16 outputs) -----
        # TODO(synk): fast path keyed on Python object identity; under jit with three
        # separate-but-equal traced args it falls back to the 3-matmul path (correct,
        # just slower).
        if (query is key) and (key is value):
            qkv = pallas_linear(query.reshape(B * Sq, D).astype(bf16),
                                self.w_qkv, self.b_qkv, out_dtype=bf16)
            qkv = qkv.reshape(B, Sq, 3, h, d_k)
            qkv = jnp.transpose(qkv, (2, 0, 3, 1, 4))        # (3, B, h, S, d_k)
            q, k, v = qkv[0], qkv[1], qkv[2]
        else:
            def proj(x, w, b):
                S = x.shape[1]
                y = pallas_linear(x.reshape(B * S, D).astype(bf16), w, b,
                                  out_dtype=bf16)
                return jnp.transpose(y.reshape(B, S, h, d_k), (0, 2, 1, 3))
            q = proj(query, self.w_q, self.b_q)
            k = proj(key, self.w_k, self.b_k)
            v = proj(value, self.w_v, self.b_v)

        # ----- mask preprocessing: padding masks stay (B,1,Sk); dense only if needed
        mask_arr, mask_mode = None, "none"
        if mask is not None:
            m = jnp.asarray(mask) != 0
            if m.ndim == 2:
                m = m[None]
            if m.shape[-2] == 1:
                mask_mode = "padding"
                mask_arr = jnp.broadcast_to(m, (B, 1, Sk)).astype(jnp.int8)
            else:
                mask_mode = "dense"
                mask_arr = jnp.broadcast_to(m, (B, Sq, Sk)).astype(jnp.int8)

        # ----- flash attention over (B, h, Sq-tiles, KV-tiles) -----
        ctx = pallas_flash_attention(q, k, v, mask_arr, mask_mode=mask_mode)

        # ----- output projection as one full-K matmul (full MXU contraction depth)
        ctx2d = jnp.transpose(ctx, (0, 2, 1, 3)).reshape(B * Sq, D)
        out = pallas_linear(ctx2d, self.w_out, self.b_out, out_dtype=jnp.float32)
        return out.reshape(B, Sq, D)

    # Pure-JAX f32 reference for verification
    def reference(self, query, key, value, mask=None):
        B, Sq, D = query.shape
        Sk = key.shape[1]

        def project(x, w, b):
            S = x.shape[1]
            y = x.reshape(B * S, D) @ w + b
            return y.reshape(B, S, self.h, self.d_k).transpose(0, 2, 1, 3)

        q = project(query, self.weights[0], self.biases[0])
        k = project(key, self.weights[1], self.biases[1])
        v = project(value, self.weights[2], self.biases[2])
        scores = jnp.einsum("bhqd,bhkd->bhqk", q, k) / math.sqrt(self.d_k)
        if mask is not None:
            keep = jnp.broadcast_to(jnp.asarray(mask) != 0, (B, Sq, Sk))
            scores = jnp.where(keep[:, None], scores, -1000000000.0)
        p = jax.nn.softmax(scores, axis=-1)
        x = jnp.einsum("bhqk,bhkd->bhqd", p, v)
        x = x.transpose(0, 2, 1, 3).reshape(B * Sq, D)
        return (x @ self.weights[3] + self.biases[3]).reshape(B, Sq, D)


# ---------------------------------------------------------------------------
if __name__ == "__main__":
    B, S, d_model, h = 2, 8, 32, 4

    root = jax.random.PRNGKey(0)
    k_param, k_q, k_k, k_v, k_x = jax.random.split(root, 5)
    mha = MultiHeadedAttentionPallas(h, d_model, k_param)

    # Tolerance relaxed vs the f32 reference because MXU operands are bf16
    # (f32 accumulation) and the softmax normalization uses the approximate
    # EUP reciprocal.
    tol = dict(atol=3e-2, rtol=3e-2)

    # 1) distinct query/key/value, no mask (mask-free kernel variant)
    query = jax.random.normal(k_q, (B, S, d_model), jnp.float32)
    key = jax.random.normal(k_k, (B, S, d_model), jnp.float32)
    value = jax.random.normal(k_v, (B, S, d_model), jnp.float32)
    out1 = jax.block_until_ready(mha(query, key, value, mask=None))
    assert out1.shape == (B, S, d_model)
    assert jnp.allclose(out1, mha.reference(query, key, value), **tol), \
        "mismatch vs reference (no mask)"

    # 2) self-attention (fused QKV path) with a causal mask (dense-mask variant)
    x = jax.random.normal(k_x, (B, S, d_model), jnp.float32)
    causal = jnp.broadcast_to(jnp.tril(jnp.ones((S, S), jnp.int32))[None], (B, S, S))
    out2 = jax.block_until_ready(mha(x, x, x, mask=causal))
    assert jnp.allclose(out2, mha.reference(x, x, x, mask=causal), **tol), \
        "mismatch vs reference (self-attention, causal mask)"

    # 3) cross-attention with Sq != Sk and a (B,1,Sk) key-padding mask
    Sk2 = 16
    kv = jax.random.normal(k_k, (B, Sk2, d_model), jnp.float32)
    pad = jnp.broadcast_to((jnp.arange(Sk2) < 12)[None, None, :],
                           (B, 1, Sk2)).astype(jnp.int32)
    out3 = jax.block_until_ready(mha(query, kv, kv, mask=pad))
    assert out3.shape == (B, S, d_model)
    assert jnp.allclose(out3, mha.reference(query, kv, kv, mask=pad), **tol), \
        "mismatch vs reference (cross-attention, key-padding mask)"

    print("KERNEL_OK")
</pallas_src>

<mosaic_0001>
module attributes {stable_mosaic.version = 11 : i64} {
  func.func @_linear_kernel(%arg0: i32, %arg1: i32, %arg2: i32, %arg3: memref<16x32xbf16, #tpu.memory_space<vmem>>, %arg4: memref<32x32xbf16, #tpu.memory_space<vmem>>, %arg5: memref<1x32xf32, #tpu.memory_space<vmem>>, %arg6: memref<16x32xbf16, #tpu.memory_space<vmem>>, %arg7: memref<16x32xf32, #tpu.memory_space<vmem>>) attributes {dimension_semantics = [#tpu.dimension_semantics<parallel>, #tpu.dimension_semantics<parallel>, #tpu.dimension_semantics<arbitrary>], iteration_bounds = array<i64: 1, 1, 1>, scalar_prefetch = 0 : i64, scratch_operands = 1 : i64, tpu.core_type = #tpu.core_type<tc>, window_params = [{transform_indices = @transform_0, window_bounds = array<i64: 16, 32>}, {transform_indices = @transform_1, window_bounds = array<i64: 32, 32>}, {transform_indices = @transform_2, window_bounds = array<i64: 1, 32>}, {transform_indices = @transform_3, window_bounds = array<i64: 16, 32>}]} {
    %c0_i32 = arith.constant 0 : i32
    %0 = arith.cmpi eq, %arg2, %c0_i32 : i32
    %1 = arith.extui %0 : i1 to i32
    %c0_i32_0 = arith.constant 0 : i32
    %2 = arith.cmpi ne, %1, %c0_i32_0 : i32
    scf.if %2 {
      %cst_10 = arith.constant 0.000000e+00 : f32
      %12 = vector.broadcast %cst_10 : f32 to vector<16x32xf32>
      %c0_11 = arith.constant 0 : index
      %c0_12 = arith.constant 0 : index
      %13 = vector.load %arg7[%c0_11, %c0_12] : memref<16x32xf32, #tpu.memory_space<vmem>>, vector<16x32xf32>
      tpu.vector_store %arg7[%c0_11, %c0_12], %12 {strides = array<i32>} : memref<16x32xf32, #tpu.memory_space<vmem>>, vector<16x32xf32>,
    } else {
    }
    %c0 = arith.constant 0 : index
    %c0_1 = arith.constant 0 : index
    %3 = vector.load %arg7[%c0, %c0_1] : memref<16x32xf32, #tpu.memory_space<vmem>>, vector<16x32xf32>
    %c0_2 = arith.constant 0 : index
    %c0_3 = arith.constant 0 : index
    %4 = vector.load %arg3[%c0_2, %c0_3] : memref<16x32xbf16, #tpu.memory_space<vmem>>, vector<16x32xbf16>
    %c0_4 = arith.constant 0 : index
    %c0_5 = arith.constant 0 : index
    %5 = vector.load %arg4[%c0_4, %c0_5] : memref<32x32xbf16, #tpu.memory_space<vmem>>, vector<32x32xbf16>
    %cst = arith.constant dense<0.000000e+00> : vector<16x32xf32>
    %6 = tpu.matmul %4, %5, %cst {dimension_numbers = #tpu.dot_dimension_numbers<[1], [0], [0], [1], [0, 0, 1, 1], [], []>} : vector<16x32xbf16>, vector<32x32xbf16>, vector<16x32xf32> -> vector<16x32xf32>
    %7 = arith.addf %3, %6 : vector<16x32xf32>
    %c0_6 = arith.constant 0 : index
    %c0_7 = arith.constant 0 : index
    %8 = vector.load %arg7[%c0_6, %c0_7] : memref<16x32xf32, #tpu.memory_space<vmem>>, vector<16x32xf32>
    tpu.vector_store %arg7[%c0_6, %c0_7], %7 {strides = array<i32>} : memref<16x32xf32, #tpu.memory_space<vmem>>, vector<16x32xf32>,
    %c0_i32_8 = arith.constant 0 : i32
    %9 = arith.cmpi eq, %arg2, %c0_i32_8 : i32
    %10 = arith.extui %9 : i1 to i32
    %c0_i32_9 = arith.constant 0 : i32
    %11 = arith.cmpi ne, %10, %c0_i32_9 : i32
    scf.if %11 {
      %c0_10 = arith.constant 0 : index
      %c0_11 = arith.constant 0 : index
      %12 = vector.load %arg7[%c0_10, %c0_11] : memref<16x32xf32, #tpu.memory_space<vmem>>, vector<16x32xf32>
      %c0_12 = arith.constant 0 : index
      %c0_13 = arith.constant 0 : index
      %13 = vector.load %arg5[%c0_12, %c0_13] : memref<1x32xf32, #tpu.memory_space<vmem>>, vector<1x32xf32>
      %14 = vector.broadcast %13 : vector<1x32xf32> to vector<16x32xf32>
      %15 = arith.addf %12, %14 : vector<16x32xf32>
      %16 = arith.truncf %15 : vector<16x32xf32> to vector<16x32xbf16>
      %c0_14 = arith.constant 0 : index
      %c0_15 = arith.constant 0 : index
      %17 = vector.load %arg6[%c0_14, %c0_15] : memref<16x32xbf16, #tpu.memory_space<vmem>>, vector<16x32xbf16>
      tpu.vector_store %arg6[%c0_14, %c0_15], %16 {strides = array<i32>} : memref<16x32xbf16, #tpu.memory_space<vmem>>, vector<16x32xbf16>,
    } else {
    }
    return
  }
  func.func @transform_0(%arg0: i32, %arg1: i32, %arg2: i32) -> (i32, i32) {
    %c0_i32 = arith.constant 0 : i32
    return %arg0, %arg2 : i32, i32
  }
  func.func @transform_1(%arg0: i32, %arg1: i32, %arg2: i32) -> (i32, i32) {
    %c0_i32 = arith.constant 0 : i32
    return %arg2, %arg1 : i32, i32
  }
  func.func @transform_2(%arg0: i32, %arg1: i32, %arg2: i32) -> (i32, i32) {
    %c0_i32 = arith.constant 0 : i32
    %c0_i32_0 = arith.constant 0 : i32
    return %c0_i32, %arg1 : i32, i32
  }
  func.func @transform_3(%arg0: i32, %arg1: i32, %arg2: i32) -> (i32, i32) {
    %c0_i32 = arith.constant 0 : i32
    return %arg0, %arg1 : i32, i32
  }
}

</mosaic_0001>

<bundles_post_ra>
// kernel: tpu_custom_call.1
= control target key start
LH: loop header
LB: loop body
LE: loop exit
PB: predicated region body
PF: predicated region fallthrough
CT: control target
= control target key end

     0   :  { %8 = vsyncpa [#allocation4], 0  ;;  %s350_s0 = inlined_call_operand.hbm [shape: bf16[16,32], index: 0, kind: input, shape index: {}]   ;;  %s351_s1 = inlined_call_operand.hbm [shape: bf16[32,32], index: 1, kind: input, shape index: {}]   ;;  %s352_s2 = inlined_call_operand.vmem [shape: f32[1,32], index: 2, kind: input, shape index: {}]   ;;  %s353_s3 = inlined_call_operand.hbm [shape: bf16[16,32], index: 3, kind: output, shape index: {}]  }
   0x1   :  { %9 = vsyncpa [#allocation7], 0 }
   0x2   :  { %10 = vsyncpa [#allocation5], 0  ;;  %s270_s12 = smov [#allocation3]   ;;  %s198_s16 = scalar_lea.hbm %s350_s0, 128 }
   0x3   :  { %s16_s13 = sshll.u32 %s270_s12, 4  ;;  %p199_p0 = scmp.ne.s32.totalorder %s350_s0, %s198_s16  ;;  %s17_s13 = int_to_ptr.vmem [resolvable:$true] %s16_s13 }
   0x4   :  { %p202_p1 = scmp.lt.u32.totalorder %s198_s16, %s350_s0 }
   0x6   :  { %p204_p2 = pnand %p202_p1, %p199_p0 }
   0x8   :  { %207 = shalt.err (!%p204_p2)
}
   0x9   :  { %s208_s21 = scalar_lea.vmem %s17_s13, 128  ;;  %p213_p4 = scmp.lt.s32.totalorder %s17_s13, %s17_s13 }
   0xa   :  { %p209_p3 = scmp.ne.s32.totalorder %s17_s13, %s208_s21  ;;  %p214_p5 = scmp.lt.s32.totalorder %s208_s21, %s208_s21 }
   0xc   :  { %p215_p6 = por %p214_p5, %p213_p4 }
   0xe   :  { %p216_p7 = pnand %p215_p6, %p209_p3 }
  0x10   :  { %219 = shalt.err (!%p216_p7)
}
  0x11   :  { %s271_s22 = smov 64   ;;  %s272_s23 = smov 4  }
  0x12   :  { %22 = dma.hbm_to_vmem [thread:$0]  %s350_s0, 128, %s17_s13, [#allocation4], %s271_s22, %s271_s22, %s272_s23  }
  0x13   :  { %s273_s26 = smov [#allocation6]   ;;  %s220_s30 = scalar_lea.hbm %s351_s1, 256 }
  0x14   :  { %s28_s27 = sshll.u32 %s273_s26, 4  ;;  %p221_p8 = scmp.ne.s32.totalorder %s351_s1, %s220_s30  ;;  %s29_s27 = int_to_ptr.vmem [resolvable:$true] %s28_s27 }
  0x15   :  { %p224_p9 = scmp.lt.u32.totalorder %s220_s30, %s351_s1 }
  0x17   :  { %p226_p10 = pnand %p224_p9, %p221_p8 }
  0x19   :  { %229 = shalt.err (!%p226_p10)
}
  0x1a   :  { %s230_s8 = scalar_lea.vmem %s29_s27, 256  ;;  %p235_p12 = scmp.lt.s32.totalorder %s29_s27, %s29_s27 }
  0x1b   :  { %p231_p11 = scmp.ne.s32.totalorder %s29_s27, %s230_s8  ;;  %p236_p13 = scmp.lt.s32.totalorder %s230_s8, %s230_s8 }
  0x1d   :  { %p237_p0 = por %p236_p13, %p235_p12 }
  0x1f   :  { %p238_p1 = pnand %p237_p0, %p231_p11 }
  0x21   :  { %241 = shalt.err (!%p238_p1)
}
  0x22   :  { %34 = dma.hbm_to_vmem [thread:$0]  %s351_s1, 256, %s29_s27, [#allocation7], %s271_s22, %s271_s22, %s272_s23  }
  0x23   :  { %264 = dma.done.wait [#allocation4], 128  }
  0x24   :  { %265 = vsyncadd [#allocation4], 4294967168 }
  0x25   :  { %266 = dma.done.wait [#allocation7], 256  }
  0x26   :  { %267 = vsyncadd [#allocation7], 4294967040  ;;  %vm48_vm0 = vcmask 261120   ;;  %v274_v0 = vmov 0.0   ;;  %vm275_vm1 = vmmov 0   ;;  %v195_v1 = vld [vmem:[#allocation6] sm:$0xff]  }
  0x27   :  { %180 = vmatprep.subr.bf16.mxu0 %v274_v0  ;;  %184 = vmatprep.mubr.msk.bf16.mxu0 %vm275_vm1, %v274_v0  ;;  %49 = vst.msk [vmem:[#allocation2] sm:$0xff] %vm48_vm0, %v274_v0  ;;  %50 = vst.msk [vmem:[#allocation2 + $0x8] sm:$0xff] %vm48_vm0, %v274_v0  ;;  %v196_v2 = vld [vmem:[#allocation6 + $0x8] sm:$0xff]   ;;  %v197_v3 = vld [vmem:[#allocation3] sm:$0xff]   ;;  %vm147_vm2 = vcmask 257024   ;;  %s276_s11 = smov [#allocation8]  }
  0x28   :  { %181 = vmatpush3.bf16.msra.mxu0 %v195_v1  ;;  %v172_v12 = vld [vmem:[%s352_s2] ss:$0 sm:$0xff]  ;;  %s155_s12 = sshll.u32 %s276_s11, 4  ;;  %s156_s12 = int_to_ptr.vmem [resolvable:$true] %s155_s12 }
  0x29   :  { %182 = vmatprep.subr.bf16.mxu0 %v274_v0  ;;  %s242_s13 = scalar_lea.vmem %s156_s12, 128  ;;  %p247_p3 = scmp.lt.s32.totalorder %s156_s12, %s156_s12 }
  0x2a   :  { %p243_p2 = scmp.ne.s32.totalorder %s156_s12, %s242_s13  ;;  %p248_p4 = scmp.lt.s32.totalorder %s242_s13, %s242_s13 }
  0x2c   :  { %183 = vmatpush3.bf16.msra.mxu0 %v196_v2  ;;  %p249_p5 = por %p248_p4, %p247_p3 }
  0x2e   :  { %v51_v4 = vld [vmem:[#allocation2] sm:$0xff]  ;;  %v52_v6 = vld [vmem:[#allocation2 + $0x8] sm:$0xff]  ;;  %p250_p6 = pnand %p249_p5, %p243_p2 }
  0x2f   :  { %185 = vmatmul.mubr.msk.bf16.vlgmr.msra.gmra.mrb[0].mxu0 %vm48_vm0, %v197_v3 }
 0x102   :  { %v114_v5 = vpop.f32.mrb[0].mxu0 }
 0x103   :  { %v121_v7 = vadd.f32 %v114_v5, %v51_v4  ;;  %v186_v8 = vpop.f32.mrb[1].mxu0 }
 0x104   :  { %v117_v9 = vpop.f32.mrb[2].mxu0 }
 0x105   :  { %123 = vst.msk [vmem:[#allocation2] sm:$0xff] %vm48_vm0, %v121_v7  ;;  %v122_v10 = vadd.f32 %v117_v9, %v52_v6  ;;  %v187_v11 = vpop.f32.mrb[3].mxu0 }
 0x107   :  { %124 = vst.msk [vmem:[#allocation2 + $0x8] sm:$0xff] %vm48_vm0, %v122_v10 }
 0x10c   :  { %v128_v13 = vld [vmem:[#allocation2] sm:$0xff] }
 0x10d   :  { %v137_v14 = vadd.f32 %v172_v12, %v128_v13 }
 0x10e   :  { %v129_v15 = vld [vmem:[#allocation2 + $0x8] sm:$0xff] }
 0x10f   :  { %v138_v16 = vadd.f32 %v172_v12, %v129_v15  ;;  %v175_v17 = vpack.c.bf16 %v137_v14, %v137_v14 }
 0x111   :  { %v176_v18 = vpack.c.bf16 %v138_v16, %v138_v16  ;;  %148 = vst.msk [vmem:[#allocation8] sm:$0xf] %vm147_vm2, %v175_v17 }
 0x113   :  { %149 = vst.msk [vmem:[#allocation8 + $0x4] sm:$0xf] %vm147_vm2, %v176_v18 }
 0x114   :  { %253 = shalt.err (!%p250_p6)
}
 0x115   :  { %s254_s15 = scalar_lea.hbm %s353_s3, 128 }
 0x116   :  { %p255_p7 = scmp.ne.s32.totalorder %s353_s3, %s254_s15  ;;  %p258_p8 = scmp.lt.u32.totalorder %s254_s15, %s353_s3 }
 0x118   :  { %p260_p9 = pnand %p258_p8, %p255_p7 }
 0x11a   :  { %263 = shalt.err (!%p260_p9)
}
 0x11b   :  { %161 = dma.vmem_to_hbm [thread:$0]  %s156_s12, 128, %s353_s3, [#allocation5], %s271_s22, %s271_s22, %s272_s23  }
 0x11c   :  { %268 = dma.done.wait [#allocation5], 128  }
 0x11d   :  { %269 = vsyncadd [#allocation5], 4294967168 }
 0x11e   :  { %165 = vsyncpa [#allocation4], 1 }
 0x11f   :  { %166 = vsyncpa [#allocation7], 1 }
 0x120   :  { %167 = vsyncpa [#allocation5], 1 }

</bundles_post_ra>
